<compile_context>
chip_gen: v7x
topology: tpu7x:2x2x1
jax: 0.10.0
libtpu: 0.0.40
codegen_flags: <defaults>
</compile_context>

<pallas_src>
import functools

import jax
import jax.numpy as jnp
from jax.experimental import pallas as pl
from jax.experimental.pallas import tpu as pltpu


# ----------------------------------------------------------------------------
# Kernel
# ----------------------------------------------------------------------------
def _parity_net_kernel(x_ref, w1_ref, w2_ref, b1_ref, b2_ref, out_ref, *, parity):
    """out = 0.5 * (net(x) + parity * net(-x)) for one batch tile."""
    # Shared first matmul: bf16 MXU operands, f32 accumulation.
    z = jnp.dot(x_ref[...].astype(jnp.bfloat16), w1_ref[...],
                preferred_element_type=jnp.float32)             # (Bt, H) f32

    b1 = b1_ref[...]                                             # (1, H)  f32
    # Both parity branches reuse z (negation folded into the tanh argument).
    # tanh runs on the EUP slot; adds/combine on the VPU, all in f32.
    h_pos = jnp.tanh(z + b1)                                     # net(+x) hidden
    h_neg = jnp.tanh(b1 - z)                                     # net(-x) hidden
    g = 0.5 * (h_pos + parity * h_neg)                           # (Bt, H) f32

    # Single second matmul on the already-combined hidden activations.
    y = jnp.dot(g.astype(jnp.bfloat16), w2_ref[...],
                preferred_element_type=jnp.float32)              # (Bt, V) f32

    c2 = 0.5 * (1.0 + parity)   # b2 contributes fully at parity=+1, cancels at -1
    if c2 != 0.0:
        y = y + c2 * b2_ref[...]
    out_ref[...] = y


# ----------------------------------------------------------------------------
# Wrapper
# ----------------------------------------------------------------------------
def _pick_batch_tile(batch, requested):
    """Rows per tile: a multiple of 8 (sublanes) or the full batch dim.

    Keeps >= 2 'parallel' grid steps when the batch allows, so both
    TensorCores are used on v7x instead of collapsing the grid to one step.
    """
    requested = max(8, 8 * (int(requested) // 8))
    batch = int(batch)
    if batch <= 8:
        return batch                       # block dim == full array dim is legal
    tile = min(requested, 8 * (batch // 8))
    if pl.cdiv(batch, tile) < 2:           # don't collapse the grid to one step
        tile = max(8, 8 * ((batch // 2) // 8))
    return tile


def _vmem_bytes_estimate(tile, V, H):
    """Rough per-step VMEM footprint (double-buffered tiles + resident weights)."""
    x_out = 2 * 2 * tile * V * 4               # double-buffered x-in + y-out (f32)
    weights = 2 * 2 * V * H * 2                # double-buffered W1 + W2 (bf16)
    biases = 2 * (H + V) * 4                   # b1 + b2 (f32)
    live = (4 * tile * H + 2 * tile * V) * 4   # z, h_pos, h_neg, g, y (f32)
    return x_out + weights + biases + live


def parity_net_forward(x_nchw, params, *, parity=1, batch_tile=512):
    """ParityNet forward. x_nchw: [B, C, L, L] float32 -> same shape."""
    B = int(x_nchw.shape[0])
    V = 1
    for d in x_nchw.shape[1:]:
        V *= int(d)
    H = int(params["w1"].shape[1])
    assert params["w1"].shape == (V, H) and params["w2"].shape == (H, V)
    assert params["b1"].shape == (1, H) and params["b2"].shape == (1, V)

    # Flatten (== torch.flatten(start_dim=1)); keep activations f32 in HBM.
    x_flat = x_nchw.reshape(B, V).astype(jnp.float32)
    # Weights go to the MXU in bf16 anyway -> ship them as bf16 (half the DMA).
    w1 = params["w1"].astype(jnp.bfloat16)
    w2 = params["w2"].astype(jnp.bfloat16)
    b1 = params["b1"].astype(jnp.float32)
    b2 = params["b2"].astype(jnp.float32)

    tile = _pick_batch_tile(B, batch_tile)
    grid = (pl.cdiv(B, tile),)

    # Raise the scoped VMEM limit only if a big tile / big lattice needs it
    # (matters first on v7x's 64 MiB physical VMEM).
    vmem_est = _vmem_bytes_estimate(tile, V, H)
    vmem_limit = None
    if vmem_est > 24 * 1024 * 1024:
        vmem_limit = int(min(1.5 * vmem_est, 96 * 1024 * 1024))

    out_flat = pl.pallas_call(
        functools.partial(_parity_net_kernel, parity=float(parity)),
        out_shape=jax.ShapeDtypeStruct((B, V), jnp.float32),
        grid_spec=pltpu.PrefetchScalarGridSpec(
            num_scalar_prefetch=0,
            grid=grid,
            in_specs=[
                pl.BlockSpec((tile, V), lambda i: (i, 0)),   # x tile
                pl.BlockSpec((V, H), lambda i: (0, 0)),      # W1 (resident, bf16)
                pl.BlockSpec((H, V), lambda i: (0, 0)),      # W2 (resident, bf16)
                pl.BlockSpec((1, H), lambda i: (0, 0)),      # b1 (resident, f32)
                pl.BlockSpec((1, V), lambda i: (0, 0)),      # b2 (resident, f32)
            ],
            out_specs=pl.BlockSpec((tile, V), lambda i: (i, 0)),
        ),
        compiler_params=pltpu.CompilerParams(
            dimension_semantics=("parallel",),               # batch tiles independent
            vmem_limit_bytes=vmem_limit,
        ),
    )(x_flat, w1, w2, b1, b2)

    return out_flat.reshape(x_nchw.shape)


# ----------------------------------------------------------------------------
# Parameters + pure-JAX references
# ----------------------------------------------------------------------------
def make_params(key, V, hidden):
    """Deterministic synthetic parameters for the inner 2-layer MLP (f32 master)."""
    k1, k2, k3, k4 = jax.random.split(key, 4)
    scale = 0.1
    return dict(
        w1=scale * jax.random.normal(k1, (V, hidden), jnp.float32),
        w2=scale * jax.random.normal(k2, (hidden, V), jnp.float32),
        b1=scale * jax.random.normal(k3, (1, hidden), jnp.float32),
        b2=scale * jax.random.normal(k4, (1, V), jnp.float32),
    )


def _net_ref(x_flat, params):
    h = jnp.tanh(x_flat @ params["w1"] + params["b1"])
    return h @ params["w2"] + params["b2"]


def parity_net_forward_ref(x_nchw, params, *, parity=1):
    """Full-f32 reference with the original module semantics."""
    B = x_nchw.shape[0]
    x = x_nchw.reshape(B, -1).astype(jnp.float32)
    y = 0.5 * (_net_ref(x, params) + parity * _net_ref(-x, params))
    return y.reshape(x_nchw.shape)


def parity_net_forward_emulated_ref(x_nchw, params, *, parity=1):
    """Pure-JAX emulation of the kernel's exact arithmetic (algebraic parity
    rewrite + bf16 MXU operands with f32 accumulation) for a tight check."""
    B = x_nchw.shape[0]
    x = x_nchw.reshape(B, -1).astype(jnp.float32)
    w1 = params["w1"].astype(jnp.bfloat16)
    w2 = params["w2"].astype(jnp.bfloat16)
    z = jnp.dot(x.astype(jnp.bfloat16), w1, preferred_element_type=jnp.float32)
    g = 0.5 * (jnp.tanh(z + params["b1"]) + parity * jnp.tanh(params["b1"] - z))
    y = jnp.dot(g.astype(jnp.bfloat16), w2, preferred_element_type=jnp.float32)
    y = y + 0.5 * (1.0 + parity) * params["b2"]
    return y.reshape(x_nchw.shape)


# ----------------------------------------------------------------------------
# Demo / self-check
# ----------------------------------------------------------------------------
if __name__ == "__main__":
    key = jax.random.PRNGKey(0)
    k_param, k_x1, k_x2 = jax.random.split(key, 3)

    C, L, HIDDEN = 1, 16, 128            # NCHW lattice field, V = C*L*L = 256
    V = C * L * L
    params = make_params(k_param, V, HIDDEN)

    # Small demo batch + a larger batch that exercises the multi-tile
    # "parallel" grid path (B=96 -> tile=48, grid=(2,)).
    x_small = jax.random.normal(k_x1, (2, C, L, L), jnp.float32)
    x_multi = jax.random.normal(k_x2, (96, C, L, L), jnp.float32)

    for x in (x_small, x_multi):
        for parity in (+1, -1):
            y = jax.block_until_ready(parity_net_forward(x, params, parity=parity))
            assert y.shape == x.shape

            # Tight check vs. an exact pure-JAX emulation of the kernel math.
            y_emul = parity_net_forward_emulated_ref(x, params, parity=parity)
            assert jnp.allclose(y, y_emul, rtol=2e-3, atol=2e-3), (
                f"kernel != emulated reference (parity={parity}, B={x.shape[0]})")

            # Loose check vs. the full-f32 module semantics: bf16 MXU operands
            # trade ~1e-2 absolute error for 3-4x MXU throughput.
            y_f32 = parity_net_forward_ref(x, params, parity=parity)
            assert jnp.allclose(y, y_f32, rtol=5e-2, atol=5e-2), (
                f"kernel deviates from f32 reference beyond bf16 tolerance "
                f"(parity={parity}, B={x.shape[0]})")

    print("KERNEL_OK")
</pallas_src>

<mosaic_0001>
module attributes {stable_mosaic.version = 11 : i64} {
  func.func @_parity_net_kernel(%arg0: i32, %arg1: memref<2x256xf32, #tpu.memory_space<vmem>>, %arg2: memref<256x128xbf16, #tpu.memory_space<vmem>>, %arg3: memref<128x256xbf16, #tpu.memory_space<vmem>>, %arg4: memref<1x128xf32, #tpu.memory_space<vmem>>, %arg5: memref<1x256xf32, #tpu.memory_space<vmem>>, %arg6: memref<2x256xf32, #tpu.memory_space<vmem>>) attributes {dimension_semantics = [#tpu.dimension_semantics<parallel>], iteration_bounds = array<i64: 1>, scalar_prefetch = 0 : i64, scratch_operands = 0 : i64, tpu.core_type = #tpu.core_type<tc>, window_params = [{transform_indices = @transform_0, window_bounds = array<i64: 2, 256>}, {pipeline_mode = #tpu.pipeline_mode<synchronous>, transform_indices = @transform_1, window_bounds = array<i64: 256, 128>}, {pipeline_mode = #tpu.pipeline_mode<synchronous>, transform_indices = @transform_2, window_bounds = array<i64: 128, 256>}, {pipeline_mode = #tpu.pipeline_mode<synchronous>, transform_indices = @transform_3, window_bounds = array<i64: 1, 128>}, {pipeline_mode = #tpu.pipeline_mode<synchronous>, transform_indices = @transform_4, window_bounds = array<i64: 1, 256>}, {transform_indices = @transform_5, window_bounds = array<i64: 2, 256>}]} {
    %c0 = arith.constant 0 : index
    %c0_0 = arith.constant 0 : index
    %0 = vector.load %arg1[%c0, %c0_0] : memref<2x256xf32, #tpu.memory_space<vmem>>, vector<2x256xf32>
    %1 = arith.truncf %0 : vector<2x256xf32> to vector<2x256xbf16>
    %c0_1 = arith.constant 0 : index
    %c0_2 = arith.constant 0 : index
    %2 = vector.load %arg2[%c0_1, %c0_2] : memref<256x128xbf16, #tpu.memory_space<vmem>>, vector<256x128xbf16>
    %cst = arith.constant dense<0.000000e+00> : vector<2x128xf32>
    %3 = tpu.matmul %1, %2, %cst {dimension_numbers = #tpu.dot_dimension_numbers<[1], [0], [0], [1], [0, 0, 1, 1], [], []>} : vector<2x256xbf16>, vector<256x128xbf16>, vector<2x128xf32> -> vector<2x128xf32>
    %c0_3 = arith.constant 0 : index
    %c0_4 = arith.constant 0 : index
    %4 = vector.load %arg4[%c0_3, %c0_4] : memref<1x128xf32, #tpu.memory_space<vmem>>, vector<1x128xf32>
    %5 = vector.broadcast %4 : vector<1x128xf32> to vector<2x128xf32>
    %6 = arith.addf %3, %5 : vector<2x128xf32>
    %7 = math.tanh %6 : vector<2x128xf32>
    %8 = vector.broadcast %4 : vector<1x128xf32> to vector<2x128xf32>
    %9 = arith.subf %8, %3 : vector<2x128xf32>
    %10 = math.tanh %9 : vector<2x128xf32>
    %cst_5 = arith.constant 1.000000e+00 : f32
    %11 = vector.broadcast %cst_5 : f32 to vector<2x128xf32>
    %12 = arith.mulf %11, %10 : vector<2x128xf32>
    %13 = arith.addf %7, %12 : vector<2x128xf32>
    %cst_6 = arith.constant 5.000000e-01 : f32
    %14 = vector.broadcast %cst_6 : f32 to vector<2x128xf32>
    %15 = arith.mulf %14, %13 : vector<2x128xf32>
    %16 = arith.truncf %15 : vector<2x128xf32> to vector<2x128xbf16>
    %c0_7 = arith.constant 0 : index
    %c0_8 = arith.constant 0 : index
    %17 = vector.load %arg3[%c0_7, %c0_8] : memref<128x256xbf16, #tpu.memory_space<vmem>>, vector<128x256xbf16>
    %cst_9 = arith.constant dense<0.000000e+00> : vector<2x256xf32>
    %18 = tpu.matmul %16, %17, %cst_9 {dimension_numbers = #tpu.dot_dimension_numbers<[1], [0], [0], [1], [0, 0, 1, 1], [], []>} : vector<2x128xbf16>, vector<128x256xbf16>, vector<2x256xf32> -> vector<2x256xf32>
    %c0_10 = arith.constant 0 : index
    %c0_11 = arith.constant 0 : index
    %19 = vector.load %arg5[%c0_10, %c0_11] : memref<1x256xf32, #tpu.memory_space<vmem>>, vector<1x256xf32>
    %cst_12 = arith.constant 1.000000e+00 : f32
    %20 = vector.broadcast %cst_12 : f32 to vector<1x256xf32>
    %21 = arith.mulf %20, %19 : vector<1x256xf32>
    %22 = vector.broadcast %21 : vector<1x256xf32> to vector<2x256xf32>
    %23 = arith.addf %18, %22 : vector<2x256xf32>
    %c0_13 = arith.constant 0 : index
    %c0_14 = arith.constant 0 : index
    %24 = vector.load %arg6[%c0_13, %c0_14] : memref<2x256xf32, #tpu.memory_space<vmem>>, vector<2x256xf32>
    tpu.vector_store %arg6[%c0_13, %c0_14], %23 {strides = array<i32>} : memref<2x256xf32, #tpu.memory_space<vmem>>, vector<2x256xf32>,
    return
  }
  func.func @transform_0(%arg0: i32) -> (i32, i32) {
    %c0_i32 = arith.constant 0 : i32
    %c0_i32_0 = arith.constant 0 : i32
    return %arg0, %c0_i32 : i32, i32
  }
  func.func @transform_1(%arg0: i32) -> (i32, i32) {
    %c0_i32 = arith.constant 0 : i32
    %c0_i32_0 = arith.constant 0 : i32
    %c0_i32_1 = arith.constant 0 : i32
    return %c0_i32, %c0_i32_0 : i32, i32
  }
  func.func @transform_2(%arg0: i32) -> (i32, i32) {
    %c0_i32 = arith.constant 0 : i32
    %c0_i32_0 = arith.constant 0 : i32
    %c0_i32_1 = arith.constant 0 : i32
    return %c0_i32, %c0_i32_0 : i32, i32
  }
  func.func @transform_3(%arg0: i32) -> (i32, i32) {
    %c0_i32 = arith.constant 0 : i32
    %c0_i32_0 = arith.constant 0 : i32
    %c0_i32_1 = arith.constant 0 : i32
    return %c0_i32, %c0_i32_0 : i32, i32
  }
  func.func @transform_4(%arg0: i32) -> (i32, i32) {
    %c0_i32 = arith.constant 0 : i32
    %c0_i32_0 = arith.constant 0 : i32
    %c0_i32_1 = arith.constant 0 : i32
    return %c0_i32, %c0_i32_0 : i32, i32
  }
  func.func @transform_5(%arg0: i32) -> (i32, i32) {
    %c0_i32 = arith.constant 0 : i32
    %c0_i32_0 = arith.constant 0 : i32
    return %arg0, %c0_i32 : i32, i32
  }
}

</mosaic_0001>

<bundles_post_ra>
// kernel: tpu_custom_call.1
= control target key start
LH: loop header
LB: loop body
LE: loop exit
PB: predicated region body
PF: predicated region fallthrough
CT: control target
= control target key end

     0   :  { %10 = vsyncpa [#allocation3], 0  ;;  %s731_s0 = inlined_call_operand.hbm [shape: f32[2,256], index: 0, kind: input, shape index: {}]   ;;  %s732_s1 = inlined_call_operand.hbm [shape: bf16[256,128], index: 1, kind: input, shape index: {}]   ;;  %s733_s2 = inlined_call_operand.hbm [shape: bf16[128,256], index: 2, kind: input, shape index: {}]   ;;  %s734_s3 = inlined_call_operand.vmem [shape: f32[1,128], index: 3, kind: input, shape index: {}]   ;;  %s735_s4 = inlined_call_operand.vmem [shape: f32[1,256], index: 4, kind: input, shape index: {}]   ;;  %s736_s5 = inlined_call_operand.hbm [shape: f32[2,256], index: 5, kind: output, shape index: {}]  }
   0x1   :  { %11 = vsyncpa [#allocation6], 0 }
   0x2   :  { %12 = vsyncpa [#allocation4], 0  ;;  %s638_s18 = smov [#allocation5]   ;;  %s544_s22 = scalar_lea.hbm %s732_s1, 2048 }
   0x3   :  { %s28_s19 = sshll.u32 %s638_s18, 4  ;;  %p545_p0 = scmp.ne.s32.totalorder %s732_s1, %s544_s22  ;;  %s29_s19 = int_to_ptr.vmem [resolvable:$true] %s28_s19 }
   0x4   :  { %p548_p1 = scmp.lt.u32.totalorder %s544_s22, %s732_s1 }
   0x6   :  { %p550_p2 = pnand %p548_p1, %p545_p0 }
   0x8   :  { %553 = shalt.err (!%p550_p2)
}
   0x9   :  { %s554_s27 = scalar_lea.vmem %s29_s19, 2048  ;;  %p559_p4 = scmp.lt.s32.totalorder %s29_s19, %s29_s19 }
   0xa   :  { %p555_p3 = scmp.ne.s32.totalorder %s29_s19, %s554_s27  ;;  %p560_p5 = scmp.lt.s32.totalorder %s554_s27, %s554_s27 }
   0xc   :  { %p561_p6 = por %p560_p5, %p559_p4 }
   0xe   :  { %p562_p7 = pnand %p561_p6, %p555_p3 }
  0x10   :  { %565 = shalt.err (!%p562_p7)
}
  0x11   :  { %s639_s28 = smov 64   ;;  %s640_s29 = smov 4  }
  0x12   :  { %34 = dma.hbm_to_vmem [thread:$0]  %s732_s1, 2048, %s29_s19, [#allocation6], %s639_s28, %s639_s28, %s640_s29  }
  0x13   :  { %s641_s7 = smov [#allocation2]   ;;  %s642_s9 = smov [#allocation7]  }
  0x14   :  { %s19_s8 = sshll.u32 %s641_s7, 4  ;;  %s40_s10 = sshll.u32 %s642_s9, 4  ;;  %s20_s8 = int_to_ptr.vmem [resolvable:$true] %s19_s8  ;;  %s41_s10 = int_to_ptr.vmem [resolvable:$true] %s40_s10 }
  0x15   :  { %s566_s13 = scalar_lea.hbm %s731_s0, 64 }
  0x16   :  { %p567_p8 = scmp.ne.s32.totalorder %s731_s0, %s566_s13  ;;  %p570_p9 = scmp.lt.u32.totalorder %s566_s13, %s731_s0 }
  0x18   :  { %p572_p10 = pnand %p570_p9, %p567_p8 }
  0x1a   :  { %575 = shalt.err (!%p572_p10)
}
  0x1b   :  { %s576_s1 = scalar_lea.vmem %s20_s8, 64  ;;  %p581_p12 = scmp.lt.s32.totalorder %s20_s8, %s20_s8 }
  0x1c   :  { %p577_p11 = scmp.ne.s32.totalorder %s20_s8, %s576_s1  ;;  %p582_p13 = scmp.lt.s32.totalorder %s576_s1, %s576_s1 }
  0x1e   :  { %p583_p0 = por %p582_p13, %p581_p12 }
  0x20   :  { %p584_p1 = pnand %p583_p0, %p577_p11 }
  0x22   :  { %587 = shalt.err (!%p584_p1)
}
  0x23   :  { %22 = dma.hbm_to_vmem [thread:$0]  %s731_s0, 64, %s20_s8, [#allocation3]  }
  0x24   :  { %s588_s22 = scalar_lea.hbm %s733_s2, 2048 }
  0x25   :  { %p589_p2 = scmp.ne.s32.totalorder %s733_s2, %s588_s22  ;;  %p592_p3 = scmp.lt.u32.totalorder %s588_s22, %s733_s2 }
  0x27   :  { %p594_p4 = pnand %p592_p3, %p589_p2 }
  0x29   :  { %597 = shalt.err (!%p594_p4)
}
  0x2a   :  { %s598_s27 = scalar_lea.vmem %s41_s10, 2048  ;;  %p603_p6 = scmp.lt.s32.totalorder %s41_s10, %s41_s10 }
  0x2b   :  { %p599_p5 = scmp.ne.s32.totalorder %s41_s10, %s598_s27  ;;  %p604_p7 = scmp.lt.s32.totalorder %s598_s27, %s598_s27 }
  0x2d   :  { %p605_p8 = por %p604_p7, %p603_p6 }
  0x2f   :  { %p606_p9 = pnand %p605_p8, %p599_p5 }
  0x31   :  { %609 = shalt.err (!%p606_p9)
}
  0x32   :  { %s643_s0 = smov 128   ;;  %s644_s28 = smov 8  }
  0x33   :  { %46 = dma.hbm_to_vmem [thread:$0]  %s733_s2, 2048, %s41_s10, [#allocation6], %s643_s0, %s643_s0, %s644_s28  }
  0x34   :  { %632 = dma.done.wait [#allocation3], 64  }
  0x35   :  { %633 = vsyncadd [#allocation3], 4294967232 }
  0x36   :  { %634 = dma.done.wait [#allocation6], 4096  }
  0x37   :  { %635 = vsyncadd [#allocation6], 4294963200  ;;  %v500_v0 = vld [vmem:[#allocation5 + $0x40] sm:$0xff]   ;;  %v502_v2 = vld [vmem:[#allocation5 + $0x48] sm:$0xff]   ;;  %v645_v33 = vmov 0   ;;  %v275_v50 = vlaneseq }
  0x38   :  { %v501_v1 = vld [vmem:[#allocation5] sm:$0xff]   ;;  %469 = vmatprep.subr.bf16.mxu0 %v500_v0  ;;  %v503_v3 = vld [vmem:[#allocation5 + $0x8] sm:$0xff]   ;;  %v504_v4 = vld [vmem:[#allocation5 + $0x50] sm:$0xff]   ;;  %397 = vmatprep.mubr.bf16.mxu1 %v645_v33 }
  0x39   :  { %470 = vmatpush3.bf16.msra.mxu0 %v501_v1  ;;  %v505_v5 = vld [vmem:[#allocation5 + $0x10] sm:$0xff]   ;;  %v506_v6 = vld [vmem:[#allocation5 + $0x58] sm:$0xff]   ;;  %v508_v8 = vld [vmem:[#allocation5 + $0x60] sm:$0xff]   ;;  %v276_v51 = vshrl.u32 %v275_v50, 7 }
  0x3a   :  { %471 = vmatprep.subr.bf16.mxu0 %v502_v2  ;;  %v507_v7 = vld [vmem:[#allocation5 + $0x18] sm:$0xff]   ;;  %v509_v9 = vld [vmem:[#allocation5 + $0x20] sm:$0xff]   ;;  %v510_v10 = vld [vmem:[#allocation5 + $0x68] sm:$0xff]  }
  0x3b   :  { %v434_v11 = vld.sshfl [vmem:[#allocation2] sm:$0x33 pattern:$0x76325410]  ;;  %v511_v12 = vld [vmem:[#allocation5 + $0x28] sm:$0xff]   ;;  %v512_v16 = vld [vmem:[#allocation5 + $0x70] sm:$0xff]  }
  0x3c   :  { %v70_v13 = vcombine.high %v434_v11, %v434_v11  ;;  %v516_v14 = vld [vmem:[#allocation7 + $0x4] ss:$8 sps:$4 sm:$0xff]   ;;  %v518_v15 = vld [vmem:[#allocation7] ss:$8 sps:$4 sm:$0xff]   ;;  %v519_v17 = vld [vmem:[#allocation7 + $0x14] ss:$8 sps:$4 sm:$0xff]   ;;  %v73_v24 = vpack.c.bf16 %v434_v11, %v434_v11 }
  0x3d   :  { %472 = vmatpush3.bf16.msra.mxu0 %v503_v3  ;;  %v521_v18 = vld [vmem:[#allocation7 + $0x10] ss:$8 sps:$4 sm:$0xff]   ;;  %365 = vmatprep.subr.bf16.mxu1 %v516_v14  ;;  %v522_v20 = vld [vmem:[#allocation7 + $0x24] ss:$8 sps:$4 sm:$0xff]   ;;  %v524_v25 = vld [vmem:[#allocation7 + $0x20] ss:$8 sps:$4 sm:$0xff]  }
  0x3e   :  { %473 = vmatprep.subr.bf16.mxu0 %v504_v4  ;;  %v74_v19 = vpack.c.bf16 %v70_v13, %v70_v13  ;;  %366 = vmatpush1.bf16.msra.mxu1 %v518_v15  ;;  %v513_v21 = vld [vmem:[#allocation5 + $0x30] sm:$0xff]   ;;  %v514_v22 = vld [vmem:[#allocation5 + $0x78] sm:$0xff]   ;;  %v528_v28 = vld [vmem:[#allocation7 + $0x44] ss:$8 sps:$4 sm:$0xff]   ;;  %v277_v52 = vsub.s32 0, %v276_v51  ;;  %v281_v54 = vsub.s32 1, %v276_v51 }
  0x3f   :  { %367 = vmatprep.subr.bf16.mxu1 %v519_v17  ;;  %v515_v23 = vld [vmem:[#allocation5 + $0x38] sm:$0xff]   ;;  %v530_v29 = vld [vmem:[#allocation7 + $0x40] ss:$8 sps:$4 sm:$0xff]   ;;  %v534_v32 = vld [vmem:[#allocation7 + $0x64] ss:$8 sps:$4 sm:$0xff]  }
  0x40   :  { %235 = vmatprep.mubr.bf16.mxu0 %v74_v19  ;;  %v525_v26 = vld [vmem:[#allocation7 + $0x34] ss:$8 sps:$4 sm:$0xff]   ;;  %v527_v27 = vld [vmem:[#allocation7 + $0x30] ss:$8 sps:$4 sm:$0xff]   ;;  %v536_v34 = vld [vmem:[#allocation7 + $0x60] ss:$8 sps:$4 sm:$0xff]  }
  0x41   :  { %474 = vmatpush3.bf16.msra.mxu0 %v505_v5  ;;  %v531_v30 = vld [vmem:[#allocation7 + $0x54] ss:$8 sps:$4 sm:$0xff]   ;;  %v533_v31 = vld [vmem:[#allocation7 + $0x50] ss:$8 sps:$4 sm:$0xff]  }
  0x42   :  { %475 = vmatprep.subr.bf16.mxu0 %v506_v6  ;;  %368 = vmatpush1.bf16.msra.mxu1 %v521_v18  ;;  %v537_v35 = vld [vmem:[#allocation7 + $0x74] ss:$8 sps:$4 sm:$0xff]   ;;  %v539_v36 = vld [vmem:[#allocation7 + $0x70] ss:$8 sps:$4 sm:$0xff]  }
  0x43   :  { %369 = vmatprep.subr.bf16.mxu1 %v522_v20  ;;  %v451_v39 = vld [vmem:[%s734_s3] ss:$0 sm:$0xff]  ;;  %s646_s3 = smov [#allocation8]  }
  0x44   :  { %v273_v53 = vld [vmem:[%s735_s4] sm:$0x3]  ;;  %s424_s9 = sshll.u32 %s646_s3, 4  ;;  %s425_s9 = int_to_ptr.vmem [resolvable:$true] %s424_s9 }
  0x45   :  { %476 = vmatpush3.bf16.msra.mxu0 %v507_v7  ;;  %v278_v55 = vrot.slane %v273_v53, %v277_v52  ;;  %v282_v56 = vrot.slane %v273_v53, %v281_v54  ;;  %s610_s10 = scalar_lea.vmem %s425_s9, 64  ;;  %p615_p11 = scmp.lt.s32.totalorder %s425_s9, %s425_s9 }
  0x46   :  { %477 = vmatprep.subr.bf16.mxu0 %v508_v8  ;;  %370 = vmatpush1.bf16.msra.mxu1 %v524_v25  ;;  %p611_p10 = scmp.ne.s32.totalorder %s425_s9, %s610_s10  ;;  %p616_p12 = scmp.lt.s32.totalorder %s610_s10, %s610_s10 }
  0x47   :  { %371 = vmatprep.subr.bf16.mxu1 %v525_v26 }
  0x48   :  { %p617_p13 = por %p616_p12, %p615_p11 }
  0x49   :  { %478 = vmatpush3.bf16.msra.mxu0 %v509_v9 }
  0x4a   :  { %479 = vmatprep.subr.bf16.mxu0 %v510_v10  ;;  %372 = vmatpush1.bf16.msra.mxu1 %v527_v27  ;;  %p618_p0 = pnand %p617_p13, %p611_p10 }
  0x4b   :  { %373 = vmatprep.subr.bf16.mxu1 %v528_v28 }
  0x4d   :  { %480 = vmatpush3.bf16.msra.mxu0 %v511_v12 }
  0x4e   :  { %481 = vmatprep.subr.bf16.mxu0 %v512_v16  ;;  %374 = vmatpush1.bf16.msra.mxu1 %v530_v29 }
  0x4f   :  { %375 = vmatprep.subr.bf16.mxu1 %v531_v30 }
  0x51   :  { %482 = vmatpush3.bf16.msra.mxu0 %v513_v21 }
  0x52   :  { %483 = vmatprep.subr.bf16.mxu0 %v514_v22  ;;  %376 = vmatpush1.bf16.msra.mxu1 %v533_v31 }
  0x53   :  { %377 = vmatprep.subr.bf16.mxu1 %v534_v32 }
  0x55   :  { %484 = vmatpush3.bf16.msra.mxu0 %v515_v23 }
  0x56   :  { %378 = vmatpush1.bf16.msra.mxu1 %v536_v34 }
  0x57   :  { %379 = vmatprep.subr.bf16.mxu1 %v537_v35 }
  0x58   :  { %236 = vmatmul.mubr.bf16.vlgmr.msra.gmra.mrb[0].mxu0 %v73_v24 }
  0x5a   :  { %380 = vmatpush1.bf16.msra.mxu1 %v539_v36 }
 0x12b   :  { %v485_v37 = vpop.f32.mrb[0].mxu0 }
 0x12c   :  { %v486_v38 = vpop.f32.mrb[1].mxu0 }
 0x12d   :  { %v487_v40 = vadd.f32 %v486_v38, %v485_v37  ;;  %v488_v41 = vpop.f32.mrb[2].mxu0 }
 0x12e   :  { %v489_v42 = vpop.f32.mrb[3].mxu0 }
 0x12f   :  { %v250_v43 = vadd.f32 %v487_v40, %v451_v39  ;;  %v252_v44 = vsub.f32 %v451_v39, %v487_v40 }
 0x131   :  { %540 = vtanh.f32 %v250_v43 }
 0x132   :  { %542 = vtanh.f32 %v252_v44 }
 0x13b   :  { %v541_v45 = vpop.eup %540 }
 0x13c   :  { %v543_v46 = vpop.eup %542 }
 0x13d   :  { %v254_v47 = vadd.f32 %v543_v46, %v541_v45 }
 0x13f   :  { %v255_v48 = vmul.f32 0.5, %v254_v47 }
 0x141   :  { %v256_v49 = vpack.c.bf16 %v255_v48, %v255_v48 }
 0x143   :  { %398 = vmatmul.mubr.bf16.vlgmr.msra.gmra.mrb[0].mxu1 %v256_v49 }
 0x216   :  { %v399_v57 = vpop.f32.mrb[0].mxu1 }
 0x217   :  { %v400_v58 = vadd.f32 %v399_v57, %v278_v55  ;;  %v401_v59 = vpop.f32.mrb[1].mxu1 }
 0x218   :  { %v402_v60 = vadd.f32 %v401_v59, %v282_v56  ;;  %v403_v61 = vpop.f32.mrb[2].mxu1 }
 0x219   :  { %v404_v62 = vpop.f32.mrb[3].mxu1 }
 0x21a   :  { %v408_v63 = vcombine.low %v400_v58, %v402_v60 }
 0x21c   :  { %468 = vst.sshfl [vmem:[#allocation8] sm:$0x33 pattern:$0x76325410] %v408_v63 }
 0x21d   :  { %621 = shalt.err (!%p618_p0)
}
 0x21e   :  { %s622_s12 = scalar_lea.hbm %s736_s5, 64 }
 0x21f   :  { %p623_p1 = scmp.ne.s32.totalorder %s736_s5, %s622_s12  ;;  %p626_p2 = scmp.lt.u32.totalorder %s622_s12, %s736_s5 }
 0x221   :  { %p628_p3 = pnand %p626_p2, %p623_p1 }
 0x223   :  { %631 = shalt.err (!%p628_p3)
}
 0x224   :  { %427 = dma.vmem_to_hbm [thread:$0]  %s425_s9, 64, %s736_s5, [#allocation4]  }
 0x225   :  { %636 = dma.done.wait [#allocation4], 64  }
 0x226   :  { %637 = vsyncadd [#allocation4], 4294967232 }
 0x227   :  { %431 = vsyncpa [#allocation3], 1 }
 0x228   :  { %432 = vsyncpa [#allocation6], 1 }
 0x229   :  { %433 = vsyncpa [#allocation4], 1 }

</bundles_post_ra>
